<compile_context>
chip_gen: v6e
topology: v6e:2x2x1
jax: 0.10.0
libtpu: 0.0.40
codegen_flags: <defaults>
</compile_context>

<pallas_src>
import functools

import jax
import jax.numpy as jnp
from jax.experimental import pallas as pl
from jax.experimental.pallas import tpu as pltpu


def _round_up(x, m):
    return ((x + m - 1) // m) * m


# ----------------------------------------------------------------------------
# Pallas kernels
# ----------------------------------------------------------------------------
def _matmul_bias_act_kernel(x_ref, w_ref, b_ref, o_ref, acc_ref, *, relu):
    """o = act(x @ w + b).  grid = (M/tm, N/tn, K/tk); K (last axis) is reduction."""
    k = pl.program_id(2)

    @pl.when(k == 0)
    def _():
        acc_ref[...] = jnp.zeros_like(acc_ref)

    acc_ref[...] += jnp.dot(
        x_ref[...], w_ref[...], preferred_element_type=jnp.float32
    )

    @pl.when(k == pl.num_programs(2) - 1)
    def _():
        r = acc_ref[...] + b_ref[...]          # f32 bias added to f32 accumulator
        if relu:
            r = jnp.maximum(r, 0.0)
        o_ref[...] = r.astype(o_ref.dtype)


def _conv3x3_kernel(x_ref, w_ref, b_ref, o_ref, pool_scr, *, fuse_pool):
    """3x3 conv (stride 1, pad 1) + bias + ReLU, optional fused 2x2 maxpool.

    x_ref    : (H+2, W+2, Cp)   whole padded image (one batch element)   bf16
    w_ref    : (3, 3, Cp, tn)                                            bf16
    b_ref    : (1, tn)                                                   f32
    o_ref    : (H, W, tn)  or  (H/2, W/2, tn) when fuse_pool             bf16
    pool_scr : (W, tn) f32 VMEM scratch (only used when fuse_pool)
    """
    _, wp2, _ = x_ref.shape
    w_out = wp2 - 2
    tn = o_ref.shape[-1]
    bias = b_ref[...]                                     # (1, tn) f32

    def conv_row(r):
        # 9 tap matmuls accumulated in registers (no acc-ref round trips).
        acc = jnp.zeros((w_out, tn), jnp.float32)
        for kh in range(3):
            for kw in range(3):
                tap = x_ref[r + kh, pl.ds(kw, w_out), :]  # (W, Cp) bf16
                acc = acc + jnp.dot(
                    tap, w_ref[kh, kw], preferred_element_type=jnp.float32
                )
        return jnp.maximum(acc + bias, 0.0)               # fused bias + ReLU

    if fuse_pool:
        wo = w_out // 2

        @pl.loop(0, o_ref.shape[0])
        def _(i):
            r0 = 2 * i
            # Vertical 2-max in registers.
            v = jnp.maximum(conv_row(r0), conv_row(r0 + 1))
            # Horizontal 2-max via stride-2 reads of a small VMEM scratch.
            pool_scr[...] = v
            ev = pool_scr[pl.ds(0, wo, stride=2), :]
            od = pool_scr[pl.ds(1, wo, stride=2), :]
            o_ref[i, :, :] = jnp.maximum(ev, od).astype(o_ref.dtype)
    else:

        @pl.loop(0, o_ref.shape[0])
        def _(r):
            o_ref[r, :, :] = conv_row(r).astype(o_ref.dtype)


def _maxpool2x2_kernel(x_ref, o_ref):
    """2x2 / stride-2 max pool (standalone fallback).

    x_ref : (th, 2, W//2, 2*C)  -- (out-row, row-in-pair, out-col, [w-in-pair, C])
    o_ref : (th, W//2, C)
    """
    c = o_ref.shape[-1]
    x = x_ref[...]
    m = jnp.maximum(x[:, 0], x[:, 1])                  # reduce over the H pair
    o_ref[...] = jnp.maximum(m[..., :c], m[..., c:])   # reduce over the W pair


# ----------------------------------------------------------------------------
# Pallas wrappers
# ----------------------------------------------------------------------------
def matmul_bias_act(x, w, b, *, relu, out_dtype=jnp.bfloat16):
    """x: (M, K) bf16, w: (K, N) bf16, b: (N,) f32 -> (M, N) out_dtype."""
    M, K = x.shape
    K2, N = w.shape
    assert K == K2
    # Pad K / N up to lane-aligned multiples of 128.
    Kp, Np = _round_up(K, 128), _round_up(N, 128)
    if Kp != K:
        x = jnp.pad(x, ((0, 0), (0, Kp - K)))
        w = jnp.pad(w, ((0, Kp - K), (0, 0)))
    if Np != N:
        w = jnp.pad(w, ((0, 0), (0, Np - N)))
        b = jnp.pad(b, ((0, Np - N),))
    if M <= 256:
        tm, Mp = M, M
    else:
        tm = 256
        Mp = _round_up(M, tm)
        if Mp != M:
            x = jnp.pad(x, ((0, Mp - M), (0, 0)))

    def _tile(d, cap):
        t = min(d, cap)
        while d % t:
            t -= 128
        return t

    # Large tiles: the FC layers are weight-streaming bound, so fewer / bigger
    # grid steps amortize the per-step pipeline overhead.  RHS block <= ~4 MiB
    # bf16 -> ~8 MiB live with double buffering (safe on v7x's 64 MiB VMEM).
    tk = _tile(Kp, 2048)
    tn = _tile(Np, 1024)
    grid = (Mp // tm, Np // tn, Kp // tk)

    kernel = functools.partial(_matmul_bias_act_kernel, relu=relu)
    out = pl.pallas_call(
        kernel,
        out_shape=jax.ShapeDtypeStruct((Mp, Np), out_dtype),
        grid_spec=pltpu.PrefetchScalarGridSpec(
            num_scalar_prefetch=0,
            grid=grid,
            in_specs=[
                pl.BlockSpec((tm, tk), lambda i, j, k: (i, k)),
                pl.BlockSpec((tk, tn), lambda i, j, k: (k, j)),
                pl.BlockSpec((1, tn), lambda i, j, k: (0, j)),
            ],
            out_specs=pl.BlockSpec((tm, tn), lambda i, j, k: (i, j)),
            scratch_shapes=[pltpu.VMEM((tm, tn), jnp.float32)],
        ),
        compiler_params=pltpu.CompilerParams(
            dimension_semantics=("parallel", "parallel", "arbitrary"),
            vmem_limit_bytes=48 * 1024 * 1024,
        ),
    )(x, w, b.astype(jnp.float32).reshape(1, -1))
    if (Mp, Np) != (M, N):
        out = out[:M, :N]
    return out


def conv3x3_relu(x_nhwc, w_hwio, bias, *, fuse_pool=False):
    """3x3 conv, stride 1, pad 1, fused bias + ReLU (+ optional 2x2 maxpool).

    x: (B, H, W, Cin) bf16 -> (B, H, W, Cout) or (B, H/2, W/2, Cout) bf16.
    """
    B, H, W, Cin = x_nhwc.shape
    Cout = w_hwio.shape[-1]
    # One padded copy of the activation (the only extra HBM write); pad tiny
    # channel counts (first layer Cin=3) up to 8 for a saner MXU K dim.
    cpad = (-Cin) % 8
    Cp = Cin + cpad
    xp = jnp.pad(x_nhwc, ((0, 0), (1, 1), (1, 1), (0, cpad)))
    w = w_hwio if cpad == 0 else jnp.pad(w_hwio, ((0, 0), (0, 0), (0, cpad), (0, 0)))

    tn = min(Cout, 256)            # Cout=64 -> 64-lane stores; accepted (see review)
    assert Cout % tn == 0
    n_tiles = Cout // tn

    if fuse_pool:
        assert H % 2 == 0 and W % 2 == 0
        Ho, Wo = H // 2, W // 2
    else:
        Ho, Wo = H, W

    # Whole padded image per (Cout tile, batch) grid step; the spatial loop runs
    # inside the kernel, so there is no per-row grid-step overhead and no input
    # re-read amplification.  Both grid axes are independent -> "parallel".
    grid = (n_tiles, B)

    kernel = functools.partial(_conv3x3_kernel, fuse_pool=fuse_pool)
    return pl.pallas_call(
        kernel,
        out_shape=jax.ShapeDtypeStruct((B, Ho, Wo, Cout), x_nhwc.dtype),
        grid_spec=pltpu.PrefetchScalarGridSpec(
            num_scalar_prefetch=0,
            grid=grid,
            in_specs=[
                pl.BlockSpec((None, H + 2, W + 2, Cp), lambda n, b: (b, 0, 0, 0)),
                pl.BlockSpec((3, 3, Cp, tn), lambda n, b: (0, 0, 0, n)),
                pl.BlockSpec((1, tn), lambda n, b: (0, n)),
            ],
            out_specs=pl.BlockSpec((None, Ho, Wo, tn), lambda n, b: (b, 0, 0, n)),
            scratch_shapes=[pltpu.VMEM((W, tn), jnp.float32)],
        ),
        compiler_params=pltpu.CompilerParams(
            dimension_semantics=("parallel", "parallel"),
            vmem_limit_bytes=48 * 1024 * 1024,
        ),
    )(xp, w, bias.astype(jnp.float32).reshape(1, Cout))


def maxpool2x2(x_nhwc):
    """Standalone 2x2 max pool, stride 2 (used only if 'M' does not follow a conv)."""
    B, H, W, C = x_nhwc.shape
    assert H % 2 == 0 and W % 2 == 0
    H2, W2 = H // 2, W // 2
    xr = x_nhwc.reshape(B, H2, 2, W2, 2 * C)   # free row-major reshape
    th = H2 if H2 <= 16 else max(d for d in range(1, 17) if H2 % d == 0)
    grid = (B, H2 // th)
    return pl.pallas_call(
        _maxpool2x2_kernel,
        out_shape=jax.ShapeDtypeStruct((B, H2, W2, C), x_nhwc.dtype),
        grid_spec=pltpu.PrefetchScalarGridSpec(
            num_scalar_prefetch=0,
            grid=grid,
            in_specs=[pl.BlockSpec((None, th, 2, W2, 2 * C),
                                   lambda b, r: (b, r, 0, 0, 0))],
            out_specs=pl.BlockSpec((None, th, W2, C),
                                   lambda b, r: (b, r, 0, 0)),
        ),
        compiler_params=pltpu.CompilerParams(
            dimension_semantics=("parallel", "parallel")
        ),
    )(xr)


def adaptive_avg_pool_nhwc(x_nhwc, out_hw):
    """glue: AdaptiveAvgPool2d bin geometry (exact PyTorch start/end indices).
    Identity when the feature map already equals out_hw (the case here)."""
    B, H, W, C = x_nhwc.shape
    oh, ow = out_hw
    if (H, W) == (oh, ow):
        return x_nhwc
    rows = []
    for i in range(oh):
        h0, h1 = (i * H) // oh, -(-((i + 1) * H) // oh)
        cols = []
        for j in range(ow):
            w0, w1 = (j * W) // ow, -(-((j + 1) * W) // ow)
            cols.append(jnp.mean(x_nhwc[:, h0:h1, w0:w1, :], axis=(1, 2)))
        rows.append(jnp.stack(cols, axis=1))
    return jnp.stack(rows, axis=1)


# ----------------------------------------------------------------------------
# QVGG parameter construction (deterministic, matches _initialize_weights)
# ----------------------------------------------------------------------------
def init_qvgg_params(key, cfg, num_classes):
    params = {"features": [], "classifier": []}
    in_channels = 3
    for v in cfg:
        if v == "M":
            params["features"].append(("maxpool",))
        else:
            key, kw = jax.random.split(key)
            fan_out = v * 3 * 3
            std = (2.0 / fan_out) ** 0.5  # kaiming_normal_(mode='fan_out', relu)
            w = std * jax.random.normal(kw, (3, 3, in_channels, v), jnp.float32)
            b = jnp.zeros((v,), jnp.float32)
            params["features"].append(
                ("conv", w.astype(jnp.bfloat16), b, in_channels, v))
            in_channels = v
    fc_dims = [(512 * 7 * 7, 4096), (4096, 4096), (4096, num_classes)]
    for fin, fout in fc_dims:
        key, kw = jax.random.split(key)
        # nn.init.normal_(weight, 0, 0.01); stored transposed as (in, out)
        w = 0.01 * jax.random.normal(kw, (fin, fout), jnp.float32)
        b = jnp.zeros((fout,), jnp.float32)
        params["classifier"].append((w.astype(jnp.bfloat16), b, fin, fout))
    return params


# ----------------------------------------------------------------------------
# Forward pass (mirrors QVGG.forward, quantize=False branches)
# ----------------------------------------------------------------------------
def qvgg_forward(x_nchw, params):
    qinput_infos = []
    # NCHW -> NHWC once at the boundary; bf16 activations on the MXU hot path.
    x = jnp.transpose(x_nchw, (0, 2, 3, 1)).astype(jnp.bfloat16)

    # self.features (conv + ReLU fused; 2x2 maxpool fused into the preceding
    # conv -- the pre-pool activation is not snapshotted, so fusion is legal).
    feats = params["features"]
    i = 0
    while i < len(feats):
        layer = feats[i]
        if layer[0] == "conv":
            _, w, b, cin, cout = layer
            # Pre-layer activation snapshot kept NHWC/bf16 (no per-layer HBM
            # transpose); see TODO(synk) at the top.
            qinput_infos.append(
                dict(type="conv", data=x, kernel_size=3, in_channels=cin,
                     out_channels=cout, stride=(1, 1), padding=(1, 1)))
            fuse = (i + 1 < len(feats) and feats[i + 1][0] == "maxpool"
                    and x.shape[1] % 2 == 0 and x.shape[2] % 2 == 0)
            x = conv3x3_relu(x, w, b, fuse_pool=fuse)
            i += 2 if fuse else 1
        else:
            x = maxpool2x2(x)
            i += 1

    # self.avgpool + flatten (PyTorch flattens NCHW -> (B, C*H*W))
    x = adaptive_avg_pool_nhwc(x, (7, 7))
    x = jnp.transpose(x, (0, 3, 1, 2)).reshape(x.shape[0], -1)

    # self.classifier: Linear, ReLU, Dropout, Linear, ReLU, Dropout, Linear
    n_fc = len(params["classifier"])
    for idx, (w, b, fin, fout) in enumerate(params["classifier"]):
        qinput_infos.append(
            dict(type="fc", data=x, in_features=fin, out_features=fout))
        relu = idx < n_fc - 1
        out_dtype = jnp.bfloat16 if relu else jnp.float32
        x = matmul_bias_act(x, w, b, relu=relu, out_dtype=out_dtype)
        # TODO(synk): nn.Dropout after the first two FCs is eval-mode identity.

    return x.astype(jnp.float32), qinput_infos


# ----------------------------------------------------------------------------
# Main
# ----------------------------------------------------------------------------
if __name__ == "__main__":
    # Small cfg consistent with QVGG: last conv must have 512 channels because
    # the classifier input is hard-coded to 512*7*7.  28x28 input -> two
    # maxpools -> 7x7 feature map.
    cfg_small = [64, "M", 512, "M"]
    num_classes = 128

    key = jax.random.PRNGKey(0)
    key, kx = jax.random.split(key)
    params = init_qvgg_params(key, cfg_small, num_classes)

    x = jax.random.normal(kx, (2, 3, 28, 28), jnp.float32)  # NCHW like PyTorch

    out, qinput_infos = qvgg_forward(x, params)
    out = jax.block_until_ready(out)
    assert out.shape == (2, num_classes)
    assert out.dtype == jnp.float32
    assert len(qinput_infos) == 2 + 3  # 2 convs + 3 fcs
    print("KERNEL_OK")
</pallas_src>

<mosaic_0001>
module attributes {stable_mosaic.version = 11 : i64} {
  func.func @_conv3x3_kernel(%arg0: i32, %arg1: i32, %arg2: memref<1x30x30x8xbf16, #tpu.memory_space<vmem>>, %arg3: memref<3x3x8x64xbf16, #tpu.memory_space<vmem>>, %arg4: memref<1x64xf32, #tpu.memory_space<vmem>>, %arg5: memref<1x14x14x64xbf16, #tpu.memory_space<vmem>>, %arg6: memref<28x64xf32, #tpu.memory_space<vmem>>) attributes {dimension_semantics = [#tpu.dimension_semantics<parallel>, #tpu.dimension_semantics<parallel>], iteration_bounds = array<i64: 1, 2>, scalar_prefetch = 0 : i64, scratch_operands = 1 : i64, tpu.core_type = #tpu.core_type<tc>, window_params = [{transform_indices = @transform_0, window_bounds = array<i64: 1, 30, 30, 8>}, {transform_indices = @transform_1, window_bounds = array<i64: 3, 3, 8, 64>}, {transform_indices = @transform_2, window_bounds = array<i64: 1, 64>}, {transform_indices = @transform_3, window_bounds = array<i64: 1, 14, 14, 64>}]} {
    %c0 = arith.constant 0 : index
    %c0_0 = arith.constant 0 : index
    %0 = vector.load %arg4[%c0, %c0_0] : memref<1x64xf32, #tpu.memory_space<vmem>>, vector<1x64xf32>
    %c0_i32 = arith.constant 0 : i32
    %c14_i32 = arith.constant 14 : i32
    %1 = arith.addi %c0_i32, %c14_i32 : i32
    %c1_i32 = arith.constant 1 : i32
    scf.for %arg7 = %c0_i32 to %1 step %c1_i32  : i32 {
      %c1_i32_2 = arith.constant 1 : i32
      %2 = arith.muli %arg7, %c1_i32_2 : i32
      %c0_i32_3 = arith.constant 0 : i32
      %3 = arith.addi %c0_i32_3, %2 : i32
      %c2_i32 = arith.constant 2 : i32
      %4 = arith.muli %c2_i32, %3 : i32
      %cst = arith.constant 0.000000e+00 : f32
      %5 = vector.broadcast %cst : f32 to vector<28x64xf32>
      %c0_i32_4 = arith.constant 0 : i32
      %6 = arith.addi %4, %c0_i32_4 : i32
      %c0_5 = arith.constant 0 : index
      %7 = arith.index_cast %6 : i32 to index
      %c0_6 = arith.constant 0 : index
      %c0_7 = arith.constant 0 : index
      %8 = vector.load %arg2[%c0_5, %7, %c0_6, %c0_7] : memref<1x30x30x8xbf16, #tpu.memory_space<vmem>>, vector<1x1x28x8xbf16>
      %9 = vector.shape_cast %8 : vector<1x1x28x8xbf16> to vector<28x8xbf16>
      %c0_8 = arith.constant 0 : index
      %c0_9 = arith.constant 0 : index
      %c0_10 = arith.constant 0 : index
      %c0_11 = arith.constant 0 : index
      %10 = vector.load %arg3[%c0_8, %c0_9, %c0_10, %c0_11] : memref<3x3x8x64xbf16, #tpu.memory_space<vmem>>, vector<1x1x8x64xbf16>
      %11 = vector.shape_cast %10 : vector<1x1x8x64xbf16> to vector<8x64xbf16>
      %cst_12 = arith.constant dense<0.000000e+00> : vector<28x64xf32>
      %12 = tpu.matmul %9, %11, %cst_12 {dimension_numbers = #tpu.dot_dimension_numbers<[1], [0], [0], [1], [0, 0, 1, 1], [], []>} : vector<28x8xbf16>, vector<8x64xbf16>, vector<28x64xf32> -> vector<28x64xf32>
      %13 = arith.addf %5, %12 : vector<28x64xf32>
      %c0_i32_13 = arith.constant 0 : i32
      %14 = arith.addi %4, %c0_i32_13 : i32
      %c0_14 = arith.constant 0 : index
      %15 = arith.index_cast %14 : i32 to index
      %c1 = arith.constant 1 : index
      %c0_15 = arith.constant 0 : index
      %16 = vector.load %arg2[%c0_14, %15, %c1, %c0_15] : memref<1x30x30x8xbf16, #tpu.memory_space<vmem>>, vector<1x1x28x8xbf16>
      %17 = vector.shape_cast %16 : vector<1x1x28x8xbf16> to vector<28x8xbf16>
      %c0_16 = arith.constant 0 : index
      %c1_17 = arith.constant 1 : index
      %c0_18 = arith.constant 0 : index
      %c0_19 = arith.constant 0 : index
      %18 = vector.load %arg3[%c0_16, %c1_17, %c0_18, %c0_19] : memref<3x3x8x64xbf16, #tpu.memory_space<vmem>>, vector<1x1x8x64xbf16>
      %19 = vector.shape_cast %18 : vector<1x1x8x64xbf16> to vector<8x64xbf16>
      %cst_20 = arith.constant dense<0.000000e+00> : vector<28x64xf32>
      %20 = tpu.matmul %17, %19, %cst_20 {dimension_numbers = #tpu.dot_dimension_numbers<[1], [0], [0], [1], [0, 0, 1, 1], [], []>} : vector<28x8xbf16>, vector<8x64xbf16>, vector<28x64xf32> -> vector<28x64xf32>
      %21 = arith.addf %13, %20 : vector<28x64xf32>
      %c0_i32_21 = arith.constant 0 : i32
      %22 = arith.addi %4, %c0_i32_21 : i32
      %c0_22 = arith.constant 0 : index
      %23 = arith.index_cast %22 : i32 to index
      %c2 = arith.constant 2 : index
      %c0_23 = arith.constant 0 : index
      %24 = vector.load %arg2[%c0_22, %23, %c2, %c0_23] : memref<1x30x30x8xbf16, #tpu.memory_space<vmem>>, vector<1x1x28x8xbf16>
      %25 = vector.shape_cast %24 : vector<1x1x28x8xbf16> to vector<28x8xbf16>
      %c0_24 = arith.constant 0 : index
      %c2_25 = arith.constant 2 : index
      %c0_26 = arith.constant 0 : index
      %c0_27 = arith.constant 0 : index
      %26 = vector.load %arg3[%c0_24, %c2_25, %c0_26, %c0_27] : memref<3x3x8x64xbf16, #tpu.memory_space<vmem>>, vector<1x1x8x64xbf16>
      %27 = vector.shape_cast %26 : vector<1x1x8x64xbf16> to vector<8x64xbf16>
      %cst_28 = arith.constant dense<0.000000e+00> : vector<28x64xf32>
      %28 = tpu.matmul %25, %27, %cst_28 {dimension_numbers = #tpu.dot_dimension_numbers<[1], [0], [0], [1], [0, 0, 1, 1], [], []>} : vector<28x8xbf16>, vector<8x64xbf16>, vector<28x64xf32> -> vector<28x64xf32>
      %29 = arith.addf %21, %28 : vector<28x64xf32>
      %c1_i32_29 = arith.constant 1 : i32
      %30 = arith.addi %4, %c1_i32_29 : i32
      %c0_30 = arith.constant 0 : index
      %31 = arith.index_cast %30 : i32 to index
      %c0_31 = arith.constant 0 : index
      %c0_32 = arith.constant 0 : index
      %32 = vector.load %arg2[%c0_30, %31, %c0_31, %c0_32] : memref<1x30x30x8xbf16, #tpu.memory_space<vmem>>, vector<1x1x28x8xbf16>
      %33 = vector.shape_cast %32 : vector<1x1x28x8xbf16> to vector<28x8xbf16>
      %c1_33 = arith.constant 1 : index
      %c0_34 = arith.constant 0 : index
      %c0_35 = arith.constant 0 : index
      %c0_36 = arith.constant 0 : index
      %34 = vector.load %arg3[%c1_33, %c0_34, %c0_35, %c0_36] : memref<3x3x8x64xbf16, #tpu.memory_space<vmem>>, vector<1x1x8x64xbf16>
      %35 = vector.shape_cast %34 : vector<1x1x8x64xbf16> to vector<8x64xbf16>
      %cst_37 = arith.constant dense<0.000000e+00> : vector<28x64xf32>
      %36 = tpu.matmul %33, %35, %cst_37 {dimension_numbers = #tpu.dot_dimension_numbers<[1], [0], [0], [1], [0, 0, 1, 1], [], []>} : vector<28x8xbf16>, vector<8x64xbf16>, vector<28x64xf32> -> vector<28x64xf32>
      %37 = arith.addf %29, %36 : vector<28x64xf32>
      %c1_i32_38 = arith.constant 1 : i32
      %38 = arith.addi %4, %c1_i32_38 : i32
      %c0_39 = arith.constant 0 : index
      %39 = arith.index_cast %38 : i32 to index
      %c1_40 = arith.constant 1 : index
      %c0_41 = arith.constant 0 : index
      %40 = vector.load %arg2[%c0_39, %39, %c1_40, %c0_41] : memref<1x30x30x8xbf16, #tpu.memory_space<vmem>>, vector<1x1x28x8xbf16>
      %41 = vector.shape_cast %40 : vector<1x1x28x8xbf16> to vector<28x8xbf16>
      %c1_42 = arith.constant 1 : index
      %c1_43 = arith.constant 1 : index
      %c0_44 = arith.constant 0 : index
      %c0_45 = arith.constant 0 : index
      %42 = vector.load %arg3[%c1_42, %c1_43, %c0_44, %c0_45] : memref<3x3x8x64xbf16, #tpu.memory_space<vmem>>, vector<1x1x8x64xbf16>
      %43 = vector.shape_cast %42 : vector<1x1x8x64xbf16> to vector<8x64xbf16>
      %cst_46 = arith.constant dense<0.000000e+00> : vector<28x64xf32>
      %44 = tpu.matmul %41, %43, %cst_46 {dimension_numbers = #tpu.dot_dimension_numbers<[1], [0], [0], [1], [0, 0, 1, 1], [], []>} : vector<28x8xbf16>, vector<8x64xbf16>, vector<28x64xf32> -> vector<28x64xf32>
      %45 = arith.addf %37, %44 : vector<28x64xf32>
      %c1_i32_47 = arith.constant 1 : i32
      %46 = arith.addi %4, %c1_i32_47 : i32
      %c0_48 = arith.constant 0 : index
      %47 = arith.index_cast %46 : i32 to index
      %c2_49 = arith.constant 2 : index
      %c0_50 = arith.constant 0 : index
      %48 = vector.load %arg2[%c0_48, %47, %c2_49, %c0_50] : memref<1x30x30x8xbf16, #tpu.memory_space<vmem>>, vector<1x1x28x8xbf16>
      %49 = vector.shape_cast %48 : vector<1x1x28x8xbf16> to vector<28x8xbf16>
      %c1_51 = arith.constant 1 : index
      %c2_52 = arith.constant 2 : index
      %c0_53 = arith.constant 0 : index
      %c0_54 = arith.constant 0 : index
      %50 = vector.load %arg3[%c1_51, %c2_52, %c0_53, %c0_54] : memref<3x3x8x64xbf16, #tpu.memory_space<vmem>>, vector<1x1x8x64xbf16>
      %51 = vector.shape_cast %50 : vector<1x1x8x64xbf16> to vector<8x64xbf16>
      %cst_55 = arith.constant dense<0.000000e+00> : vector<28x64xf32>
      %52 = tpu.matmul %49, %51, %cst_55 {dimension_numbers = #tpu.dot_dimension_numbers<[1], [0], [0], [1], [0, 0, 1, 1], [], []>} : vector<28x8xbf16>, vector<8x64xbf16>, vector<28x64xf32> -> vector<28x64xf32>
      %53 = arith.addf %45, %52 : vector<28x64xf32>
      %c2_i32_56 = arith.constant 2 : i32
      %54 = arith.addi %4, %c2_i32_56 : i32
      %c0_57 = arith.constant 0 : index
      %55 = arith.index_cast %54 : i32 to index
      %c0_58 = arith.constant 0 : index
      %c0_59 = arith.constant 0 : index
      %56 = vector.load %arg2[%c0_57, %55, %c0_58, %c0_59] : memref<1x30x30x8xbf16, #tpu.memory_space<vmem>>, vector<1x1x28x8xbf16>
      %57 = vector.shape_cast %56 : vector<1x1x28x8xbf16> to vector<28x8xbf16>
      %c2_60 = arith.constant 2 : index
      %c0_61 = arith.constant 0 : index
      %c0_62 = arith.constant 0 : index
      %c0_63 = arith.constant 0 : index
      %58 = vector.load %arg3[%c2_60, %c0_61, %c0_62, %c0_63] : memref<3x3x8x64xbf16, #tpu.memory_space<vmem>>, vector<1x1x8x64xbf16>
      %59 = vector.shape_cast %58 : vector<1x1x8x64xbf16> to vector<8x64xbf16>
      %cst_64 = arith.constant dense<0.000000e+00> : vector<28x64xf32>
      %60 = tpu.matmul %57, %59, %cst_64 {dimension_numbers = #tpu.dot_dimension_numbers<[1], [0], [0], [1], [0, 0, 1, 1], [], []>} : vector<28x8xbf16>, vector<8x64xbf16>, vector<28x64xf32> -> vector<28x64xf32>
      %61 = arith.addf %53, %60 : vector<28x64xf32>
      %c2_i32_65 = arith.constant 2 : i32
      %62 = arith.addi %4, %c2_i32_65 : i32
      %c0_66 = arith.constant 0 : index
      %63 = arith.index_cast %62 : i32 to index
      %c1_67 = arith.constant 1 : index
      %c0_68 = arith.constant 0 : index
      %64 = vector.load %arg2[%c0_66, %63, %c1_67, %c0_68] : memref<1x30x30x8xbf16, #tpu.memory_space<vmem>>, vector<1x1x28x8xbf16>
      %65 = vector.shape_cast %64 : vector<1x1x28x8xbf16> to vector<28x8xbf16>
      %c2_69 = arith.constant 2 : index
      %c1_70 = arith.constant 1 : index
      %c0_71 = arith.constant 0 : index
      %c0_72 = arith.constant 0 : index
      %66 = vector.load %arg3[%c2_69, %c1_70, %c0_71, %c0_72] : memref<3x3x8x64xbf16, #tpu.memory_space<vmem>>, vector<1x1x8x64xbf16>
      %67 = vector.shape_cast %66 : vector<1x1x8x64xbf16> to vector<8x64xbf16>
      %cst_73 = arith.constant dense<0.000000e+00> : vector<28x64xf32>
      %68 = tpu.matmul %65, %67, %cst_73 {dimension_numbers = #tpu.dot_dimension_numbers<[1], [0], [0], [1], [0, 0, 1, 1], [], []>} : vector<28x8xbf16>, vector<8x64xbf16>, vector<28x64xf32> -> vector<28x64xf32>
      %69 = arith.addf %61, %68 : vector<28x64xf32>
      %c2_i32_74 = arith.constant 2 : i32
      %70 = arith.addi %4, %c2_i32_74 : i32
      %c0_75 = arith.constant 0 : index
      %71 = arith.index_cast %70 : i32 to index
      %c2_76 = arith.constant 2 : index
      %c0_77 = arith.constant 0 : index
      %72 = vector.load %arg2[%c0_75, %71, %c2_76, %c0_77] : memref<1x30x30x8xbf16, #tpu.memory_space<vmem>>, vector<1x1x28x8xbf16>
      %73 = vector.shape_cast %72 : vector<1x1x28x8xbf16> to vector<28x8xbf16>
      %c2_78 = arith.constant 2 : index
      %c2_79 = arith.constant 2 : index
      %c0_80 = arith.constant 0 : index
      %c0_81 = arith.constant 0 : index
      %74 = vector.load %arg3[%c2_78, %c2_79, %c0_80, %c0_81] : memref<3x3x8x64xbf16, #tpu.memory_space<vmem>>, vector<1x1x8x64xbf16>
      %75 = vector.shape_cast %74 : vector<1x1x8x64xbf16> to vector<8x64xbf16>
      %cst_82 = arith.constant dense<0.000000e+00> : vector<28x64xf32>
      %76 = tpu.matmul %73, %75, %cst_82 {dimension_numbers = #tpu.dot_dimension_numbers<[1], [0], [0], [1], [0, 0, 1, 1], [], []>} : vector<28x8xbf16>, vector<8x64xbf16>, vector<28x64xf32> -> vector<28x64xf32>
      %77 = arith.addf %69, %76 : vector<28x64xf32>
      %78 = vector.broadcast %0 : vector<1x64xf32> to vector<28x64xf32>
      %79 = arith.addf %77, %78 : vector<28x64xf32>
      %cst_83 = arith.constant 0.000000e+00 : f32
      %80 = vector.broadcast %cst_83 : f32 to vector<28x64xf32>
      %81 = arith.maximumf %79, %80 : vector<28x64xf32>
      %c1_i32_84 = arith.constant 1 : i32
      %82 = arith.addi %4, %c1_i32_84 : i32
      %cst_85 = arith.constant 0.000000e+00 : f32
      %83 = vector.broadcast %cst_85 : f32 to vector<28x64xf32>
      %c0_i32_86 = arith.constant 0 : i32
      %84 = arith.addi %82, %c0_i32_86 : i32
      %c0_87 = arith.constant 0 : index
      %85 = arith.index_cast %84 : i32 to index
      %c0_88 = arith.constant 0 : index
      %c0_89 = arith.constant 0 : index
      %86 = vector.load %arg2[%c0_87, %85, %c0_88, %c0_89] : memref<1x30x30x8xbf16, #tpu.memory_space<vmem>>, vector<1x1x28x8xbf16>
      %87 = vector.shape_cast %86 : vector<1x1x28x8xbf16> to vector<28x8xbf16>
      %c0_90 = arith.constant 0 : index
      %c0_91 = arith.constant 0 : index
      %c0_92 = arith.constant 0 : index
      %c0_93 = arith.constant 0 : index
      %88 = vector.load %arg3[%c0_90, %c0_91, %c0_92, %c0_93] : memref<3x3x8x64xbf16, #tpu.memory_space<vmem>>, vector<1x1x8x64xbf16>
      %89 = vector.shape_cast %88 : vector<1x1x8x64xbf16> to vector<8x64xbf16>
      %cst_94 = arith.constant dense<0.000000e+00> : vector<28x64xf32>
      %90 = tpu.matmul %87, %89, %cst_94 {dimension_numbers = #tpu.dot_dimension_numbers<[1], [0], [0], [1], [0, 0, 1, 1], [], []>} : vector<28x8xbf16>, vector<8x64xbf16>, vector<28x64xf32> -> vector<28x64xf32>
      %91 = arith.addf %83, %90 : vector<28x64xf32>
      %c0_i32_95 = arith.constant 0 : i32
      %92 = arith.addi %82, %c0_i32_95 : i32
      %c0_96 = arith.constant 0 : index
      %93 = arith.index_cast %92 : i32 to index
      %c1_97 = arith.constant 1 : index
      %c0_98 = arith.constant 0 : index
      %94 = vector.load %arg2[%c0_96, %93, %c1_97, %c0_98] : memref<1x30x30x8xbf16, #tpu.memory_space<vmem>>, vector<1x1x28x8xbf16>
      %95 = vector.shape_cast %94 : vector<1x1x28x8xbf16> to vector<28x8xbf16>
      %c0_99 = arith.constant 0 : index
      %c1_100 = arith.constant 1 : index
      %c0_101 = arith.constant 0 : index
      %c0_102 = arith.constant 0 : index
      %96 = vector.load %arg3[%c0_99, %c1_100, %c0_101, %c0_102] : memref<3x3x8x64xbf16, #tpu.memory_space<vmem>>, vector<1x1x8x64xbf16>
      %97 = vector.shape_cast %96 : vector<1x1x8x64xbf16> to vector<8x64xbf16>
      %cst_103 = arith.constant dense<0.000000e+00> : vector<28x64xf32>
      %98 = tpu.matmul %95, %97, %cst_103 {dimension_numbers = #tpu.dot_dimension_numbers<[1], [0], [0], [1], [0, 0, 1, 1], [], []>} : vector<28x8xbf16>, vector<8x64xbf16>, vector<28x64xf32> -> vector<28x64xf32>
      %99 = arith.addf %91, %98 : vector<28x64xf32>
      %c0_i32_104 = arith.constant 0 : i32
      %100 = arith.addi %82, %c0_i32_104 : i32
      %c0_105 = arith.constant 0 : index
      %101 = arith.index_cast %100 : i32 to index
      %c2_106 = arith.constant 2 : index
      %c0_107 = arith.constant 0 : index
      %102 = vector.load %arg2[%c0_105, %101, %c2_106, %c0_107] : memref<1x30x30x8xbf16, #tpu.memory_space<vmem>>, vector<1x1x28x8xbf16>
      %103 = vector.shape_cast %102 : vector<1x1x28x8xbf16> to vector<28x8xbf16>
      %c0_108 = arith.constant 0 : index
      %c2_109 = arith.constant 2 : index
      %c0_110 = arith.constant 0 : index
      %c0_111 = arith.constant 0 : index
      %104 = vector.load %arg3[%c0_108, %c2_109, %c0_110, %c0_111] : memref<3x3x8x64xbf16, #tpu.memory_space<vmem>>, vector<1x1x8x64xbf16>
      %105 = vector.shape_cast %104 : vector<1x1x8x64xbf16> to vector<8x64xbf16>
      %cst_112 = arith.constant dense<0.000000e+00> : vector<28x64xf32>
      %106 = tpu.matmul %103, %105, %cst_112 {dimension_numbers = #tpu.dot_dimension_numbers<[1], [0], [0], [1], [0, 0, 1, 1], [], []>} : vector<28x8xbf16>, vector<8x64xbf16>, vector<28x64xf32> -> vector<28x64xf32>
      %107 = arith.addf %99, %106 : vector<28x64xf32>
      %c1_i32_113 = arith.constant 1 : i32
      %108 = arith.addi %82, %c1_i32_113 : i32
      %c0_114 = arith.constant 0 : index
      %109 = arith.index_cast %108 : i32 to index
      %c0_115 = arith.constant 0 : index
      %c0_116 = arith.constant 0 : index
      %110 = vector.load %arg2[%c0_114, %109, %c0_115, %c0_116] : memref<1x30x30x8xbf16, #tpu.memory_space<vmem>>, vector<1x1x28x8xbf16>
      %111 = vector.shape_cast %110 : vector<1x1x28x8xbf16> to vector<28x8xbf16>
      %c1_117 = arith.constant 1 : index
      %c0_118 = arith.constant 0 : index
      %c0_119 = arith.constant 0 : index
      %c0_120 = arith.constant 0 : index
      %112 = vector.load %arg3[%c1_117, %c0_118, %c0_119, %c0_120] : memref<3x3x8x64xbf16, #tpu.memory_space<vmem>>, vector<1x1x8x64xbf16>
      %113 = vector.shape_cast %112 : vector<1x1x8x64xbf16> to vector<8x64xbf16>
      %cst_121 = arith.constant dense<0.000000e+00> : vector<28x64xf32>
      %114 = tpu.matmul %111, %113, %cst_121 {dimension_numbers = #tpu.dot_dimension_numbers<[1], [0], [0], [1], [0, 0, 1, 1], [], []>} : vector<28x8xbf16>, vector<8x64xbf16>, vector<28x64xf32> -> vector<28x64xf32>
      %115 = arith.addf %107, %114 : vector<28x64xf32>
      %c1_i32_122 = arith.constant 1 : i32
      %116 = arith.addi %82, %c1_i32_122 : i32
      %c0_123 = arith.constant 0 : index
      %117 = arith.index_cast %116 : i32 to index
      %c1_124 = arith.constant 1 : index
      %c0_125 = arith.constant 0 : index
      %118 = vector.load %arg2[%c0_123, %117, %c1_124, %c0_125] : memref<1x30x30x8xbf16, #tpu.memory_space<vmem>>, vector<1x1x28x8xbf16>
      %119 = vector.shape_cast %118 : vector<1x1x28x8xbf16> to vector<28x8xbf16>
      %c1_126 = arith.constant 1 : index
      %c1_127 = arith.constant 1 : index
      %c0_128 = arith.constant 0 : index
      %c0_129 = arith.constant 0 : index
      %120 = vector.load %arg3[%c1_126, %c1_127, %c0_128, %c0_129] : memref<3x3x8x64xbf16, #tpu.memory_space<vmem>>, vector<1x1x8x64xbf16>
      %121 = vector.shape_cast %120 : vector<1x1x8x64xbf16> to vector<8x64xbf16>
      %cst_130 = arith.constant dense<0.000000e+00> : vector<28x64xf32>
      %122 = tpu.matmul %119, %121, %cst_130 {dimension_numbers = #tpu.dot_dimension_numbers<[1], [0], [0], [1], [0, 0, 1, 1], [], []>} : vector<28x8xbf16>, vector<8x64xbf16>, vector<28x64xf32> -> vector<28x64xf32>
      %123 = arith.addf %115, %122 : vector<28x64xf32>
      %c1_i32_131 = arith.constant 1 : i32
      %124 = arith.addi %82, %c1_i32_131 : i32
      %c0_132 = arith.constant 0 : index
      %125 = arith.index_cast %124 : i32 to index
      %c2_133 = arith.constant 2 : index
      %c0_134 = arith.constant 0 : index
      %126 = vector.load %arg2[%c0_132, %125, %c2_133, %c0_134] : memref<1x30x30x8xbf16, #tpu.memory_space<vmem>>, vector<1x1x28x8xbf16>
      %127 = vector.shape_cast %126 : vector<1x1x28x8xbf16> to vector<28x8xbf16>
      %c1_135 = arith.constant 1 : index
      %c2_136 = arith.constant 2 : index
      %c0_137 = arith.constant 0 : index
      %c0_138 = arith.constant 0 : index
      %128 = vector.load %arg3[%c1_135, %c2_136, %c0_137, %c0_138] : memref<3x3x8x64xbf16, #tpu.memory_space<vmem>>, vector<1x1x8x64xbf16>
      %129 = vector.shape_cast %128 : vector<1x1x8x64xbf16> to vector<8x64xbf16>
      %cst_139 = arith.constant dense<0.000000e+00> : vector<28x64xf32>
      %130 = tpu.matmul %127, %129, %cst_139 {dimension_numbers = #tpu.dot_dimension_numbers<[1], [0], [0], [1], [0, 0, 1, 1], [], []>} : vector<28x8xbf16>, vector<8x64xbf16>, vector<28x64xf32> -> vector<28x64xf32>
      %131 = arith.addf %123, %130 : vector<28x64xf32>
      %c2_i32_140 = arith.constant 2 : i32
      %132 = arith.addi %82, %c2_i32_140 : i32
      %c0_141 = arith.constant 0 : index
      %133 = arith.index_cast %132 : i32 to index
      %c0_142 = arith.constant 0 : index
      %c0_143 = arith.constant 0 : index
      %134 = vector.load %arg2[%c0_141, %133, %c0_142, %c0_143] : memref<1x30x30x8xbf16, #tpu.memory_space<vmem>>, vector<1x1x28x8xbf16>
      %135 = vector.shape_cast %134 : vector<1x1x28x8xbf16> to vector<28x8xbf16>
      %c2_144 = arith.constant 2 : index
      %c0_145 = arith.constant 0 : index
      %c0_146 = arith.constant 0 : index
      %c0_147 = arith.constant 0 : index
      %136 = vector.load %arg3[%c2_144, %c0_145, %c0_146, %c0_147] : memref<3x3x8x64xbf16, #tpu.memory_space<vmem>>, vector<1x1x8x64xbf16>
      %137 = vector.shape_cast %136 : vector<1x1x8x64xbf16> to vector<8x64xbf16>
      %cst_148 = arith.constant dense<0.000000e+00> : vector<28x64xf32>
      %138 = tpu.matmul %135, %137, %cst_148 {dimension_numbers = #tpu.dot_dimension_numbers<[1], [0], [0], [1], [0, 0, 1, 1], [], []>} : vector<28x8xbf16>, vector<8x64xbf16>, vector<28x64xf32> -> vector<28x64xf32>
      %139 = arith.addf %131, %138 : vector<28x64xf32>
      %c2_i32_149 = arith.constant 2 : i32
      %140 = arith.addi %82, %c2_i32_149 : i32
      %c0_150 = arith.constant 0 : index
      %141 = arith.index_cast %140 : i32 to index
      %c1_151 = arith.constant 1 : index
      %c0_152 = arith.constant 0 : index
      %142 = vector.load %arg2[%c0_150, %141, %c1_151, %c0_152] : memref<1x30x30x8xbf16, #tpu.memory_space<vmem>>, vector<1x1x28x8xbf16>
      %143 = vector.shape_cast %142 : vector<1x1x28x8xbf16> to vector<28x8xbf16>
      %c2_153 = arith.constant 2 : index
      %c1_154 = arith.constant 1 : index
      %c0_155 = arith.constant 0 : index
      %c0_156 = arith.constant 0 : index
      %144 = vector.load %arg3[%c2_153, %c1_154, %c0_155, %c0_156] : memref<3x3x8x64xbf16, #tpu.memory_space<vmem>>, vector<1x1x8x64xbf16>
      %145 = vector.shape_cast %144 : vector<1x1x8x64xbf16> to vector<8x64xbf16>
      %cst_157 = arith.constant dense<0.000000e+00> : vector<28x64xf32>
      %146 = tpu.matmul %143, %145, %cst_157 {dimension_numbers = #tpu.dot_dimension_numbers<[1], [0], [0], [1], [0, 0, 1, 1], [], []>} : vector<28x8xbf16>, vector<8x64xbf16>, vector<28x64xf32> -> vector<28x64xf32>
      %147 = arith.addf %139, %146 : vector<28x64xf32>
      %c2_i32_158 = arith.constant 2 : i32
      %148 = arith.addi %82, %c2_i32_158 : i32
      %c0_159 = arith.constant 0 : index
      %149 = arith.index_cast %148 : i32 to index
      %c2_160 = arith.constant 2 : index
      %c0_161 = arith.constant 0 : index
      %150 = vector.load %arg2[%c0_159, %149, %c2_160, %c0_161] : memref<1x30x30x8xbf16, #tpu.memory_space<vmem>>, vector<1x1x28x8xbf16>
      %151 = vector.shape_cast %150 : vector<1x1x28x8xbf16> to vector<28x8xbf16>
      %c2_162 = arith.constant 2 : index
      %c2_163 = arith.constant 2 : index
      %c0_164 = arith.constant 0 : index
      %c0_165 = arith.constant 0 : index
      %152 = vector.load %arg3[%c2_162, %c2_163, %c0_164, %c0_165] : memref<3x3x8x64xbf16, #tpu.memory_space<vmem>>, vector<1x1x8x64xbf16>
      %153 = vector.shape_cast %152 : vector<1x1x8x64xbf16> to vector<8x64xbf16>
      %cst_166 = arith.constant dense<0.000000e+00> : vector<28x64xf32>
      %154 = tpu.matmul %151, %153, %cst_166 {dimension_numbers = #tpu.dot_dimension_numbers<[1], [0], [0], [1], [0, 0, 1, 1], [], []>} : vector<28x8xbf16>, vector<8x64xbf16>, vector<28x64xf32> -> vector<28x64xf32>
      %155 = arith.addf %147, %154 : vector<28x64xf32>
      %156 = vector.broadcast %0 : vector<1x64xf32> to vector<28x64xf32>
      %157 = arith.addf %155, %156 : vector<28x64xf32>
      %cst_167 = arith.constant 0.000000e+00 : f32
      %158 = vector.broadcast %cst_167 : f32 to vector<28x64xf32>
      %159 = arith.maximumf %157, %158 : vector<28x64xf32>
      %160 = arith.maximumf %81, %159 : vector<28x64xf32>
      %c0_168 = arith.constant 0 : index
      %c0_169 = arith.constant 0 : index
      %161 = vector.load %arg6[%c0_168, %c0_169] : memref<28x64xf32, #tpu.memory_space<vmem>>, vector<28x64xf32>
      tpu.vector_store %arg6[%c0_168, %c0_169], %160 {strides = array<i32>} : memref<28x64xf32, #tpu.memory_space<vmem>>, vector<28x64xf32>,
      %c0_170 = arith.constant 0 : index
      %c0_171 = arith.constant 0 : index
      %162 = tpu.strided_load %arg6[%c0_170, %c0_171] {strides = array<i32: 2, 1>} : memref<28x64xf32, #tpu.memory_space<vmem>>, vector<14x64xf32>
      %c1_172 = arith.constant 1 : index
      %c0_173 = arith.constant 0 : index
      %163 = tpu.strided_load %arg6[%c1_172, %c0_173] {strides = array<i32: 2, 1>} : memref<28x64xf32, #tpu.memory_space<vmem>>, vector<14x64xf32>
      %164 = arith.maximumf %162, %163 : vector<14x64xf32>
      %165 = arith.truncf %164 : vector<14x64xf32> to vector<14x64xbf16>
      %c0_174 = arith.constant 0 : index
      %166 = arith.index_cast %3 : i32 to index
      %c0_175 = arith.constant 0 : index
      %c0_176 = arith.constant 0 : index
      %167 = vector.load %arg5[%c0_174, %166, %c0_175, %c0_176] : memref<1x14x14x64xbf16, #tpu.memory_space<vmem>>, vector<1x1x14x64xbf16>
      %168 = vector.shape_cast %167 : vector<1x1x14x64xbf16> to vector<14x64xbf16>
      %169 = vector.shape_cast %165 : vector<14x64xbf16> to vector<1x1x14x64xbf16>
      tpu.vector_store %arg5[%c0_174, %166, %c0_175, %c0_176], %169 {strides = array<i32>} : memref<1x14x14x64xbf16, #tpu.memory_space<vmem>>, vector<1x1x14x64xbf16>,
    }
    %c14_i32_1 = arith.constant 14 : i32
    return
  }
  func.func @transform_0(%arg0: i32, %arg1: i32) -> (i32, i32, i32, i32) {
    %c0_i32 = arith.constant 0 : i32
    %c0_i32_0 = arith.constant 0 : i32
    %c0_i32_1 = arith.constant 0 : i32
    %c0_i32_2 = arith.constant 0 : i32
    return %arg1, %c0_i32, %c0_i32_0, %c0_i32_1 : i32, i32, i32, i32
  }
  func.func @transform_1(%arg0: i32, %arg1: i32) -> (i32, i32, i32, i32) {
    %c0_i32 = arith.constant 0 : i32
    %c0_i32_0 = arith.constant 0 : i32
    %c0_i32_1 = arith.constant 0 : i32
    %c0_i32_2 = arith.constant 0 : i32
    return %c0_i32, %c0_i32_0, %c0_i32_1, %arg0 : i32, i32, i32, i32
  }
  func.func @transform_2(%arg0: i32, %arg1: i32) -> (i32, i32) {
    %c0_i32 = arith.constant 0 : i32
    %c0_i32_0 = arith.constant 0 : i32
    return %c0_i32, %arg0 : i32, i32
  }
  func.func @transform_3(%arg0: i32, %arg1: i32) -> (i32, i32, i32, i32) {
    %c0_i32 = arith.constant 0 : i32
    %c0_i32_0 = arith.constant 0 : i32
    %c0_i32_1 = arith.constant 0 : i32
    return %arg1, %c0_i32, %c0_i32_0, %arg0 : i32, i32, i32, i32
  }
}

</mosaic_0001>

<bundles_post_ra>
// kernel: tpu_custom_call.1
= control target key start
LH: loop header
LB: loop body
LE: loop exit
PB: predicated region body
PF: predicated region fallthrough
CT: control target
= control target key end

     0   :  { %s2032_s12 = smov 0   ;;  %s2034_s13 = smov 0   ;;  %s2356_s0 = inlined_call_operand.vmem [shape: bf16[2,30,30,8], index: 0, kind: input, shape index: {}]   ;;  %s2357_s1 = inlined_call_operand.vmem [shape: bf16[3,3,8,64], index: 1, kind: input, shape index: {}]   ;;  %s2358_s2 = inlined_call_operand.vmem [shape: f32[1,64], index: 2, kind: input, shape index: {}]   ;;  %s2359_s3 = inlined_call_operand.vmem [shape: bf16[2,14,14,64], index: 3, kind: output, shape index: {}]  }
   0x1   :  { %s2036_s14 = smov 0  }
   0x2 LB: > { %s22_s15 = sadd.s32 1, %s2002_s13  ;;  %p1646_p0 = scmp.ge.s32.totalorder %s2006_s14, 1  ;;  %s2006_s14 = sphi %s2036_s14, %s13_s14   ;;  %s2002_s13 = sphi %s2034_s13, %s2370_s13   ;;  %s1998_s12 = sphi %s2032_s12, %s2369_s12  }
   0x3   : > { %p23_p1 = scmp.ge.s32.totalorder %s22_s15, 2  ;;  %p168_p2 = scmp.lt.s32.totalorder %s2006_s14, 3 }
   0x5   : > { %s2372_s15 = smov (%p23_p1, %s22_s15), 0  ;;  %p169_p3 = pnand %p1646_p0, %p168_p2 }
   0x6   : > { %p202_p4 = scmp.lt.s32.totalorder (!%p169_p3), %s1998_s12, 1  ;;  %s2065_s26 = smov (!%p169_p3), 0  }
   0x7   : > { %172 = sbr.rel (%p169_p3) target bundleno = 316 (0x13c), region = 32 }
   0xc   : > { %v2053_v0 = vld [vmem:[%s2358_s2] ss:$0 sm:$0xff]  ;;  %s2374_s12 = smov (!%p202_p4, %s1998_s12), 1 }
   0xd   : > { %2361 = vst [vmem:[#allocation3_spill] sm:$0xff] %v2053_v0  ;;  %s1930_s18 = smul.u32 480, %s2374_s12 }
   0xe   : > { %s1931_s19 = smul.u32 112, %s2374_s12 }
   0xf   : > { %s2058_s22 = scalar_lea.vmem %s2356_s0, %s1930_s18 }
  0x10   : > { %s2063_s25 = scalar_lea.vmem %s2359_s3, %s1931_s19 }
  0x11 LB: >> { %v2073_v1 = vld [vmem:[%s2357_s1] sm:$0xf]  ;;  %vm275_vm0 = vcmask 1043456   ;;  %v2078_v2 = vld [vmem:[%s2357_s1 + $0x4] sm:$0xf]  ;;  %s1743_s6 = sshll.u32 %s2010_s26, 5  ;;  %s2010_s26 = sphi %s2065_s26, %s229_s26  }
  0x12   : >> { %1913 = vmatprep.subr.msk.bf16.mxu1 %vm275_vm0, %v2073_v1  ;;  %v2084_v3 = vsel %vm275_vm0, %v2073_v1, 0  ;;  %1912 = vmatprep.subr.msk.bf16.mxu0 %vm275_vm0, %v2078_v2  ;;  %v2090_v4 = vsel %vm275_vm0, %v2078_v2, 0  ;;  %v2095_v5 = vld [vmem:[%s2357_s1 + $0x8] sm:$0xf]  ;;  %v2103_v6 = vld [vmem:[%s2357_s1 + $0xc] sm:$0xf]  ;;  %s2106_s9 = scalar_lea.vmem %s2058_s22, %s1743_s6 }
  0x13   : >> { %1811 = vmatpush3.bf16.msra.mxu1 %v2084_v3  ;;  %1805 = vmatpush3.bf16.msra.mxu0 %v2090_v4  ;;  %vm268_vm1 = vcmask 64512   ;;  %v234_v7 = vld [vmem:[%s2106_s9] sm:$0xf]  ;;  %v235_v8 = vld [vmem:[%s2106_s9 + $0x4] sm:$0xf]  ;;  %v2122_v17 = vsel %vm275_vm0, %v2103_v6, 0 }
  0x14   : >> { %1914 = vmatprep.subr.msk.bf16.mxu0 %vm275_vm0, %v2095_v5  ;;  %1915 = vmatprep.subr.msk.bf16.mxu1 %vm275_vm0, %v2103_v6  ;;  %v388_v9 = vld [vmem:[%s2106_s9] sm:$0xe]  ;;  %v1653_v10 = vcombine.low %v234_v7, %v235_v8  ;;  %v236_v12 = vld [vmem:[%s2106_s9 + $0x8] sm:$0xf]  ;;  %v237_v13 = vld [vmem:[%s2106_s9 + $0xc] sm:$0x3] }
  0x15   : >> { %v1661_v11 = vcombine.low %v388_v9, %v235_v8  ;;  %v239_v14 = vld [vmem:[%s2106_s9 + $0xc] sm:$0x7]  ;;  %v1657_v16 = vcombine.low %v236_v12, %v237_v13  ;;  %v1666_v18 = vld [vmem:[%s2106_s9 + $0x10] sm:$0xf]  ;;  %v1667_v19 = vld [vmem:[%s2106_s9 + $0x14] sm:$0xf] }
  0x16   : >> { %v2118_v15 = vcombine.low %v236_v12, %v239_v14  ;;  %1812 = vmatprep.mubr.msk.bf16.mxu1 %vm268_vm1, %v1653_v10  ;;  %v254_v20 = vshrl.u32 %v1653_v10, 16  ;;  %v256_v21 = vshll.u32 %v1653_v10, 16  ;;  %v2127_v22 = vcombine.low %v1666_v18, %v1667_v19  ;;  %v1668_v23 = vld [vmem:[%s2106_s9 + $0x18] sm:$0xf]  ;;  %v2133_v24 = vld [vmem:[%s2357_s1 + $0x14] sm:$0xf] }
  0x17   : >> { %v395_v25 = vrot.slane %v1661_v11, 1  ;;  %1813 = vmatmul.mubr.msk.bf16.vlgmr.msra.gmra.mxu1 %vm268_vm1, %v1657_v16  ;;  %v1675_v28 = vld [vmem:[%s2106_s9 + $0x1c] sm:$0x7]  ;;  %v1680_v33 = vld [vmem:[%s2106_s9 + $0x10] sm:$0xe]  ;;  %vm394_vm3 = vcmask 1046528  }
  0x18   : >> { %v261_v26 = vshll.u32 %v2118_v15, 16  ;;  %v265_v27 = vshrl.u32 %v2118_v15, 16  ;;  %v258_v29 = vrot.slane %v256_v21, 1  ;;  %1823 = vmatpush3.bf16.msra.mxu1 %v2122_v17  ;;  %1824 = vmatprep.mubr.msk.bf16.mxu1 %vm268_vm1, %v2127_v22  ;;  %v1669_v30 = vld [vmem:[%s2106_s9 + $0x1c] sm:$0x3]  ;;  %v396_v31 = vrot.slane %v2118_v15, 1 }
  0x19   : >> { %v1677_v32 = vcombine.low %v1668_v23, %v1675_v28  ;;  %vm252_vm2 = vsmask.f32 7424  ;;  %1917 = vmatprep.subr.msk.bf16.mxu1 %vm275_vm0, %v2133_v24  ;;  %v1682_v35 = vcombine.low %v1680_v33, %v1667_v19  ;;  %v550_v38 = vshll.u32 %v2127_v22, 16  ;;  %v1687_v39 = vld [vmem:[%s2106_s9 + $0x20] sm:$0xf]  ;;  %s1749_s24 = sshll.u32 %s2010_s26, 3 }
  0x1a   : >> { %v263_v34 = vrot.slane %v261_v26, 1  ;;  %v259_v36 = vor.u32 %v258_v29, %v254_v20  ;;  %v2151_v41 = vcombine.low %v1668_v23, %v1669_v30  ;;  %v1688_v43 = vld [vmem:[%s2106_s9 + $0x24] sm:$0xf]  ;;  %v2157_v45 = vsel %vm275_vm0, %v2095_v5, 0  ;;  %v2163_v47 = vld [vmem:[%s2357_s1 + $0x10] sm:$0xf]  ;;  %s1510_s27 = scalar_lea.vmem %s2063_s25, %s1749_s24 }
  0x1b   : >> { %v2147_v37 = vrot.slane %v1677_v32, 1  ;;  %v630_v42 = vrot.slane %v1682_v35, 1  ;;  %v397_v46 = vsel %vm394_vm3, %v395_v25, %v396_v31  ;;  %v1689_v48 = vld [vmem:[%s2106_s9 + $0x28] sm:$0xf]  ;;  %v548_v49 = vshrl.u32 %v2127_v22, 16  ;;  %s229_s26 = sadd.s32 1, %s2010_s26  }
  0x1c   : >> { %v267_v40 = vor.u32 %v265_v27, %v263_v34  ;;  %v264_v44 = vsel %vm252_vm2, %v259_v36, %v263_v34  ;;  %v552_v50 = vrot.slane %v550_v38, 1  ;;  %v555_v51 = vshll.u32 %v1677_v32, 16  ;;  %v1696_v53 = vld [vmem:[%s2106_s9 + $0x2c] sm:$0x7]  ;;  %v2184_v57 = vld [vmem:[%s2357_s1 + $0x1c] sm:$0xf] }
  0x1d   : >> { %1806 = vmatprep.mubr.msk.bf16.mxu0 %vm268_vm1, %v264_v44  ;;  %v2168_v52 = vcombine.low %v1687_v39, %v1688_v43  ;;  %v2174_v54 = vsel %vm275_vm0, %v2133_v24, 0  ;;  %v632_v55 = vsel %vm394_vm3, %v630_v42, %v2147_v37  ;;  %v1698_v56 = vcombine.low %v1689_v48, %v1696_v53  ;;  %v1691_v11 = vld [vmem:[%s2357_s1 + $0x18] sm:$0xf]  ;;  %v1701_v18 = vld [vmem:[%s2106_s9 + $0x20] sm:$0xe]  ;;  %p226_p5 = scmp.ge.s32.totalorder %s229_s26, 14  }
  0x1e   : >> { %1807 = vmatmul.mubr.msk.bf16.vlgmr.msra.gmra.mxu0 %vm268_vm1, %v267_v40  ;;  %v553_v61 = vor.u32 %v552_v50, %v548_v49  ;;  %v557_v62 = vrot.slane %v555_v51, 1  ;;  %v569_v9 = vsel %vm275_vm0, %v2163_v47, 0  ;;  %v559_v12 = vshrl.u32 %v1677_v32, 16  ;;  %v1702_v21 = vld [vmem:[%s2357_s1 + $0x20] sm:$0xf] }
  0x1f   : >> { %1817 = vmatpush3.bf16.msra.mxu0 %v2157_v45  ;;  %1825 = vmatmul.mubr.msk.bf16.vlgmr.msra.gmra.mxu1 %vm268_vm1, %v2151_v41  ;;  %v783_v58 = vshrl.u32 %v2168_v52, 16  ;;  %v785_v59 = vshll.u32 %v2168_v52, 16  ;;  %v790_v60 = vshll.u32 %v1698_v56, 16  ;;  %v2204_v13 = vsel %vm275_vm0, %v2184_v57, 0  ;;  %v1690_v25 = vld [vmem:[%s2106_s9 + $0x2c] sm:$0x3] }
  0x20   : >> { %1818 = vmatprep.mubr.msk.bf16.mxu0 %vm268_vm1, %v397_v46  ;;  %1916 = vmatprep.subr.msk.bf16.mxu0 %vm275_vm0, %v2163_v47  ;;  %v558_v10 = vsel %vm252_vm2, %v553_v61, %v557_v62  ;;  %v794_v15 = vshrl.u32 %v1698_v56, 16  ;;  %v561_v16 = vor.u32 %v559_v12, %v557_v62  ;;  %v722_v20 = vsel %vm275_vm0, %v1691_v11, 0  ;;  %v1733_v30 = vld [vmem:[%s2106_s9 + $0x30] sm:$0xe] }
  0x21   : >> { %1835 = vmatpush3.bf16.msra.mxu1 %v2174_v54  ;;  %1836 = vmatprep.mubr.msk.bf16.mxu1 %vm268_vm1, %v632_v55  ;;  %v787_v63 = vrot.slane %v785_v59, 1  ;;  %v792_v7 = vrot.slane %v790_v60, 1  ;;  %v1703_v23 = vcombine.low %v1701_v18, %v1688_v43  ;;  %v866_v26 = vrot.slane %v1698_v56, 1 }
  0x22   : >> { %1919 = vmatprep.subr.msk.bf16.mxu1 %vm275_vm0, %v2184_v57  ;;  %v1693_v27 = vcombine.low %v1689_v48, %v1690_v25  ;;  %v875_v28 = vsel %vm275_vm0, %v1702_v21, 0  ;;  %vm1486_vm4 = vcmask 523264   ;;  %vm1490_vm5 = vcmask 519168  }
  0x23   : >> { %v788_v8 = vor.u32 %v787_v63, %v783_v58  ;;  %v796_v19 = vor.u32 %v794_v15, %v792_v7  ;;  %vm1512_vm6 = vcmask 518144  }
  0x25   : >> { %v793_v14 = vsel %vm252_vm2, %v788_v8, %v792_v7 }
  0x26   : >> { %1819 = vmatmul.mubr.msk.bf16.vlgmr.msra.gmra.mxu0 %vm268_vm1, %v396_v31  ;;  %v1723_v31 = vld [vmem:[%s2106_s9 + $0x38] sm:$0xf] }
  0x27   : >> { %1829 = vmatpush3.bf16.msra.mxu0 %v569_v9  ;;  %1837 = vmatmul.mubr.msk.bf16.vlgmr.msra.gmra.mxu1 %vm268_vm1, %v2147_v37 }
  0x28   : >> { %1830 = vmatprep.mubr.msk.bf16.mxu0 %vm268_vm1, %v558_v10  ;;  %1918 = vmatprep.subr.msk.bf16.mxu0 %vm275_vm0, %v1691_v11 }
  0x29   : >> { %1847 = vmatpush3.bf16.msra.mxu1 %v2204_v13  ;;  %1848 = vmatprep.mubr.msk.bf16.mxu1 %vm268_vm1, %v793_v14 }
  0x2a   : >> { %1921 = vmatprep.subr.msk.bf16.mxu1 %vm275_vm0, %v2078_v2  ;;  %v865_v2 = vrot.slane %v1703_v23, 1 }
  0x2c   : >> { %v867_v29 = vsel %vm394_vm3, %v865_v2, %v866_v26 }
  0x2e   : >> { %1831 = vmatmul.mubr.msk.bf16.vlgmr.msra.gmra.mxu0 %vm268_vm1, %v561_v16 }
  0x2f   : >> { %1841 = vmatpush3.bf16.msra.mxu0 %v722_v20  ;;  %1849 = vmatmul.mubr.msk.bf16.vlgmr.msra.gmra.mxu1 %vm268_vm1, %v796_v19 }
  0x30   : >> { %1842 = vmatprep.mubr.msk.bf16.mxu0 %vm268_vm1, %v2168_v52  ;;  %1920 = vmatprep.subr.msk.bf16.mxu0 %vm275_vm0, %v1702_v21 }
  0x31   : >> { %1859 = vmatpush3.bf16.msra.mxu1 %v2090_v4  ;;  %1860 = vmatprep.mubr.msk.bf16.mxu1 %vm268_vm1, %v558_v10  ;;  %v1722_v4 = vld [vmem:[%s2106_s9 + $0x34] sm:$0xf] }
  0x32   : >> { %1923 = vmatprep.subr.msk.bf16.mxu1 %vm275_vm0, %v2095_v5  ;;  %v1729_v5 = vld [vmem:[%s2106_s9 + $0x3c] sm:$0x7] }
  0x33   : >> { %v1730_v32 = vcombine.low %v1723_v31, %v1729_v5 }
  0x35   : >> { %v1413_v35 = vrot.slane %v1730_v32, 1  ;;  %v1342_v38 = vshll.u32 %v1730_v32, 16  ;;  %v1346_v42 = vshrl.u32 %v1730_v32, 16 }
  0x36   : >> { %1843 = vmatmul.mubr.msk.bf16.vlgmr.msra.gmra.mxu0 %vm268_vm1, %v1693_v27 }
  0x37   : >> { %1853 = vmatpush3.bf16.msra.mxu0 %v875_v28  ;;  %1861 = vmatmul.mubr.msk.bf16.vlgmr.msra.gmra.mxu1 %vm268_vm1, %v561_v16  ;;  %v1344_v40 = vrot.slane %v1342_v38, 1 }
  0x38   : >> { %1854 = vmatprep.mubr.msk.bf16.mxu0 %vm268_vm1, %v867_v29  ;;  %1922 = vmatprep.subr.msk.bf16.mxu0 %vm275_vm0, %v2073_v1  ;;  %v1721_v1 = vld [vmem:[%s2106_s9 + $0x30] sm:$0xf] }
  0x39   : >> { %1871 = vmatpush3.bf16.msra.mxu1 %v2157_v45  ;;  %1872 = vmatprep.mubr.msk.bf16.mxu1 %vm268_vm1, %v632_v55  ;;  %v1348_v43 = vor.u32 %v1346_v42, %v1344_v40 }
  0x3a   : >> { %1925 = vmatprep.subr.msk.bf16.mxu1 %vm275_vm0, %v2163_v47 }
  0x3e   : >> { %1855 = vmatmul.mubr.msk.bf16.vlgmr.msra.gmra.mxu0 %vm268_vm1, %v866_v26 }
  0x3f   : >> { %1865 = vmatpush3.bf16.msra.mxu0 %v2084_v3  ;;  %1873 = vmatmul.mubr.msk.bf16.vlgmr.msra.gmra.mxu1 %vm268_vm1, %v2147_v37  ;;  %v1725_v3 = vcombine.low %v1721_v1, %v1722_v4 }
  0x40   : >> { %1866 = vmatprep.mubr.msk.bf16.mxu0 %vm268_vm1, %v2127_v22  ;;  %1924 = vmatprep.subr.msk.bf16.mxu0 %vm275_vm0, %v2103_v6  ;;  %v1734_v22 = vcombine.low %v1733_v30, %v1722_v4  ;;  %v1724_v6 = vld [vmem:[%s2106_s9 + $0x3c] sm:$0x3] }
  0x41   : >> { %1883 = vmatpush3.bf16.msra.mxu1 %v569_v9  ;;  %1884 = vmatprep.mubr.msk.bf16.mxu1 %vm268_vm1, %v793_v14  ;;  %v1337_v33 = vshll.u32 %v1725_v3, 16  ;;  %v1726_v36 = vcombine.low %v1723_v31, %v1724_v6  ;;  %v1335_v37 = vshrl.u32 %v1725_v3, 16 }
  0x42   : >> { %1927 = vmatprep.subr.msk.bf16.mxu1 %vm275_vm0, %v1691_v11  ;;  %v1412_v34 = vrot.slane %v1734_v22, 1 }
  0x44   : >> { %v1414_v39 = vsel %vm394_vm3, %v1412_v34, %v1413_v35 }
  0x46   : >> { %1867 = vmatmul.mubr.msk.bf16.vlgmr.msra.gmra.mxu0 %vm268_vm1, %v2151_v41 }
  0x47   : >> { %1877 = vmatpush3.bf16.msra.mxu0 %v2122_v17  ;;  %1885 = vmatmul.mubr.msk.bf16.vlgmr.msra.gmra.mxu1 %vm268_vm1, %v796_v19  ;;  %v1339_v17 = vrot.slane %v1337_v33, 1 }
  0x48   : >> { %1878 = vmatprep.mubr.msk.bf16.mxu0 %vm268_vm1, %v2168_v52  ;;  %1926 = vmatprep.subr.msk.bf16.mxu0 %vm275_vm0, %v2133_v24 }
  0x49   : >> { %1895 = vmatpush3.bf16.msra.mxu1 %v722_v20  ;;  %1896 = vmatprep.mubr.msk.bf16.mxu1 %vm268_vm1, %v1725_v3  ;;  %v1340_v24 = vor.u32 %v1339_v17, %v1335_v37 }
  0x4a   : >> { %1929 = vmatprep.subr.msk.bf16.mxu1 %vm275_vm0, %v1702_v21 }
  0x4b   : >> { %v1345_v41 = vsel %vm252_vm2, %v1340_v24, %v1344_v40 }
  0x4e   : >> { %1879 = vmatmul.mubr.msk.bf16.vlgmr.msra.gmra.mxu0 %vm268_vm1, %v1693_v27 }
  0x4f   : >> { %1889 = vmatpush3.bf16.msra.mxu0 %v2174_v54  ;;  %1897 = vmatmul.mubr.msk.bf16.vlgmr.msra.gmra.mxu1 %vm268_vm1, %v1726_v36 }
  0x50   : >> { %1890 = vmatprep.mubr.msk.bf16.mxu0 %vm268_vm1, %v867_v29  ;;  %1928 = vmatprep.subr.msk.bf16.mxu0 %vm275_vm0, %v2184_v57 }
  0x51   : >> { %1907 = vmatpush3.bf16.msra.mxu1 %v875_v28  ;;  %1908 = vmatprep.mubr.msk.bf16.mxu1 %vm268_vm1, %v1414_v39 }
  0x56   : >> { %1891 = vmatmul.mubr.msk.bf16.vlgmr.msra.gmra.mxu0 %vm268_vm1, %v866_v26 }
  0x57   : >> { %1901 = vmatpush3.bf16.msra.mxu0 %v2204_v13  ;;  %1909 = vmatmul.mubr.msk.bf16.vlgmr.msra.gmra.mxu1 %vm268_vm1, %v1413_v35 }
  0x58   : >> { %1902 = vmatprep.mubr.msk.bf16.mxu0 %vm268_vm1, %v1345_v41 }
  0x5e   : >> { %1903 = vmatmul.mubr.msk.bf16.vlgmr.msra.gmra.mxu0 %vm268_vm1, %v1348_v43 }
  0xd7   : >> { %v1814_v44 = vpop.f32.mrf.mxu1 }
  0xd9   : >> { %v373_v45 = vpop.f32.mrf.mxu1 }
  0xdb   : >> { %v1815_v46 = vpop.f32.mrf.mxu1 }
  0xdd   : >> { %v376_v47 = vpop.f32.mrf.mxu1 }
  0xde   : >> { %v1808_v48 = vpop.f32.mrf.mxu0 }
  0xdf   : >> { %v1826_v49 = vpop.f32.mrf.mxu1  ;;  %v382_v31 = vadd.f32 %v1814_v44, %v1808_v48 }
  0xe0   : >> { %v313_v50 = vpop.f32.mrf.mxu0 }
  0xe1   : >> { %v523_v51 = vpop.f32.mrf.mxu1  ;;  %v374_v6 = vadd.f32 %v373_v45, %v313_v50 }
  0xe2   : >> { %v1809_v52 = vpop.f32.mrf.mxu0 }
  0xe3   : >> { %v2281_v53 = vpop.f32.mrf.mxu1  ;;  %v385_v36 = vadd.f32 %v1815_v46, %v1809_v52 }
  0xe4   : >> { %v316_v54 = vpop.f32.mrf.mxu0 }
  0xe5   : >> { %v2283_v55 = vpop.f32.mrf.mxu1  ;;  %v377_v24 = vadd.f32 %v376_v47, %v316_v54 }
  0xe6   : >> { %v1820_v56 = vpop.f32.mrf.mxu0 }
  0xe7   : >> { %v2285_v57 = vpop.f32.mrf.mxu1  ;;  %v458_v33 = vadd.f32 %v1820_v56, %v382_v31 }
  0xe8   : >> { %v441_v58 = vpop.f32.mrf.mxu0 }
  0xe9   : >> { %v2287_v59 = vpop.f32.mrf.mxu1  ;;  %v456_v37 = vadd.f32 %v441_v58, %v374_v6  ;;  %v540_v41 = vadd.f32 %v1826_v49, %v458_v33 }
  0xea   : >> { %v1821_v60 = vpop.f32.mrf.mxu0 }
  0xeb   : >> { %v2289_v61 = vpop.f32.mrf.mxu1  ;;  %v459_v40 = vadd.f32 %v1821_v60, %v385_v36  ;;  %v538_v44 = vadd.f32 %v523_v51, %v456_v37 }
  0xec   : >> { %v444_v62 = vpop.f32.mrf.mxu0 }
  0xed   : >> { %v2291_v63 = vpop.f32.mrf.mxu1  ;;  %v541_v46 = vadd.f32 %v2281_v53, %v459_v40 }
  0xee   : >> { %v1832_v7 = vpop.f32.mrf.mxu0 }
  0xef   : >> { %v2293_v8 = vpop.f32.mrf.mxu1 }
  0xf0   : >> { %v605_v9 = vpop.f32.mrf.mxu0 }
  0xf1   : >> { %v2295_v10 = vpop.f32.mrf.mxu1  ;;  %v620_v56 = vadd.f32 %v605_v9, %v538_v44 }
  0xf2   : >> { %v1833_v11 = vpop.f32.mrf.mxu0 }
  0xf3   : >> { %v2297_v12 = vpop.f32.mrf.mxu1  ;;  %v623_v54 = vadd.f32 %v1833_v11, %v541_v46 }
  0xf4   : >> { %v608_v13 = vpop.f32.mrf.mxu0 }
  0xf5   : >> { %v2299_v14 = vpop.f32.mrf.mxu1 }
  0xf6   : >> { %2362 = vst [vmem:[#allocation4_spill] sm:$0xff] %v2299_v14  ;;  %v1844_v15 = vpop.f32.mrf.mxu0  ;;  %v457_v14 = vadd.f32 %v444_v62, %v377_v24 }
  0xf7   : >> { %v1862_v16 = vpop.f32.mrf.mxu1 }
  0xf8   : >> { %v758_v18 = vpop.f32.mrf.mxu0  ;;  %v539_v49 = vadd.f32 %v2283_v55, %v457_v14 }
  0xf9   : >> { %v978_v19 = vpop.f32.mrf.mxu1 }
  0xfa   : >> { %v2301_v20 = vpop.f32.mrf.mxu0 }
  0xfb   : >> { %v1863_v21 = vpop.f32.mrf.mxu1 }
  0xfc   : >> { %v2303_v23 = vpop.f32.mrf.mxu0 }
  0xfd   : >> { %v981_v25 = vpop.f32.mrf.mxu1 }
  0xfe   : >> { %v2305_v2 = vpop.f32.mrf.mxu0 }
  0xff   : >> { %v1874_v26 = vpop.f32.mrf.mxu1 }
 0x100   : >> { %v2307_v27 = vpop.f32.mrf.mxu0 }
 0x101   : >> { %v1076_v28 = vpop.f32.mrf.mxu1 }
 0x102   : >> { %v2309_v29 = vpop.f32.mrf.mxu0 }
 0x103   : >> { %2363 = vst [vmem:[#allocation5_spill] sm:$0xff] %v2309_v29  ;;  %v1875_v1 = vpop.f32.mrf.mxu1  ;;  %v622_v29 = vadd.f32 %v1832_v7, %v540_v41 }
 0x104   : >> { %v2311_v4 = vpop.f32.mrf.mxu0 }
 0x105   : >> { %2364 = vst [vmem:[#allocation6_spill] sm:$0xff] %v2311_v4  ;;  %v1079_v5 = vpop.f32.mrf.mxu1  ;;  %v693_v60 = vadd.f32 %v2285_v57, %v622_v29 }
 0x106   : >> { %v1868_v30 = vpop.f32.mrf.mxu0 }
 0x107   : >> { %v1886_v3 = vpop.f32.mrf.mxu1  ;;  %v1036_v38 = vadd.f32 %v1868_v30, %v1862_v16 }
 0x108   : >> { %v1027_v32 = vpop.f32.mrf.mxu0 }
 0x109   : >> { %v1182_v22 = vpop.f32.mrf.mxu1  ;;  %v1028_v43 = vadd.f32 %v1027_v32, %v978_v19  ;;  %v1093_v45 = vadd.f32 %v1874_v26, %v1036_v38  ;;  %v621_v19 = vadd.f32 %v608_v13, %v539_v49  ;;  %v691_v26 = vadd.f32 %v2287_v59, %v620_v56 }
 0x10a   : >> { %v1869_v34 = vpop.f32.mrf.mxu0 }
 0x10b   : >> { %v1887_v35 = vpop.f32.mrf.mxu1  ;;  %v1039_v0 = vadd.f32 %v1869_v34, %v1863_v21  ;;  %v1091_v30 = vadd.f32 %v1076_v28, %v1028_v43  ;;  %v775_v21 = vadd.f32 %v1844_v15, %v693_v60  ;;  %v773_v6 = vadd.f32 %v758_v18, %v691_v26 }
 0x10c   : >> { %v1030_v17 = vpop.f32.mrf.mxu0  ;;  %v694_v28 = vadd.f32 %v2289_v61, %v623_v54 }
 0x10d   : >> { %v1185_v39 = vpop.f32.mrf.mxu1  ;;  %v1031_v58 = vadd.f32 %v1030_v17, %v981_v25  ;;  %v1094_v51 = vadd.f32 %v1875_v1, %v1039_v0  ;;  %v692_v0 = vadd.f32 %v2291_v63, %v621_v19  ;;  %v857_v13 = vadd.f32 %v2293_v8, %v775_v21 }
 0x10e   : >> { %v1880_v42 = vpop.f32.mrf.mxu0  ;;  %v776_v57 = vadd.f32 %v2301_v20, %v694_v28  ;;  %v855_v61 = vadd.f32 %v2295_v10, %v773_v6 }
 0x10f   : >> { %v1898_v4 = vpop.f32.mrf.mxu1  ;;  %v1146_v16 = vadd.f32 %v1880_v42, %v1093_v45  ;;  %v1092_v32 = vadd.f32 %v1079_v5, %v1031_v58  ;;  %v774_v5 = vadd.f32 %v2303_v23, %v692_v0  ;;  %v928_v18 = vadd.f32 %v2305_v2, %v857_v13  ;;  %v2366_v23 = vld [vmem:[#allocation5_spill] sm:$0xff]  ;;  %v2367_v2 = vld [vmem:[#allocation4_spill] sm:$0xff] }
 0x110   : >> { %v1129_v48 = vpop.f32.mrf.mxu0  ;;  %v926_v20 = vadd.f32 %v2307_v27, %v855_v61  ;;  %v858_v63 = vadd.f32 %v2297_v12, %v776_v57  ;;  %v2368_v27 = vld [vmem:[#allocation6_spill] sm:$0xff] }
 0x111   : >> { %v1312_v50 = vpop.f32.mrf.mxu1  ;;  %v1144_v7 = vadd.f32 %v1129_v48, %v1091_v30  ;;  %v1199_v25 = vadd.f32 %v1886_v3, %v1146_v16  ;;  %v856_v42 = vadd.f32 %v2367_v2, %v774_v5 }
 0x112   : >> { %v1881_v52 = vpop.f32.mrf.mxu0  ;;  %v929_v41 = vadd.f32 %v2366_v23, %v858_v63 }
 0x113   : >> { %v1899_v47 = vpop.f32.mrf.mxu1  ;;  %v1147_v53 = vadd.f32 %v1881_v52, %v1094_v51  ;;  %v1197_v14 = vadd.f32 %v1182_v22, %v1144_v7  ;;  %v927_v48 = vadd.f32 %v2368_v27, %v856_v42 }
 0x114   : >> { %v1132_v62 = vpop.f32.mrf.mxu0 }
 0x115   : >> { %v1315_v31 = vpop.f32.mrf.mxu1  ;;  %v1145_v33 = vadd.f32 %v1132_v62, %v1092_v32  ;;  %v1200_v1 = vadd.f32 %v1887_v35, %v1147_v53  ;;  %v2365_v35 = vld [vmem:[#allocation3_spill] sm:$0xff] }
 0x116   : >> { %v1892_v9 = vpop.f32.mrf.mxu0  ;;  %v938_v40 = vadd.f32 %v2365_v35, %v928_v18  ;;  %v939_v16 = vadd.f32 %v2365_v35, %v929_v41  ;;  %v937_v7 = vadd.f32 %v2365_v35, %v927_v48 }
 0x117   : >> { %v1252_v55 = vadd.f32 %v1892_v9, %v1199_v25  ;;  %v1910_v59 = vpop.f32.mrf.mxu1  ;;  %v1198_v36 = vadd.f32 %v1185_v39, %v1145_v33 }
 0x118   : >> { %v1235_v11 = vpop.f32.mrf.mxu0  ;;  %v942_v58 = vmax.f32 %v938_v40, 0.0  ;;  %v941_v6 = vmax.f32 %v937_v7, 0.0 }
 0x119   : >> { %v1250_v29 = vadd.f32 %v1235_v11, %v1197_v14  ;;  %v1329_v22 = vadd.f32 %v1898_v4, %v1252_v55  ;;  %v1455_v37 = vpop.f32.mrf.mxu1  ;;  %v936_v4 = vadd.f32 %v2365_v35, %v926_v20 }
 0x11a   : >> { %v1893_v15 = vpop.f32.mrf.mxu0 }
 0x11b   : >> { %v1253_v34 = vadd.f32 %v1893_v15, %v1200_v1  ;;  %v1327_v24 = vadd.f32 %v1312_v50, %v1250_v29  ;;  %v1911_v12 = vpop.f32.mrf.mxu1  ;;  %v940_v62 = vmax.f32 %v936_v4, 0.0 }
 0x11c   : >> { %v1238_v3 = vpop.f32.mrf.mxu0 }
 0x11d   : >> { %v1251_v17 = vadd.f32 %v1238_v3, %v1198_v36  ;;  %v1330_v39 = vadd.f32 %v1899_v47, %v1253_v34  ;;  %v1458_v51 = vpop.f32.mrf.mxu1 }
 0x11e   : >> { %v1904_v8 = vpop.f32.mrf.mxu0 }
 0x11f   : >> { %v1406_v38 = vadd.f32 %v1904_v8, %v1329_v22  ;;  %v1328_v52 = vadd.f32 %v1315_v31, %v1251_v17  ;;  %v943_v31 = vmax.f32 %v939_v16, 0.0 }
 0x120   : >> { %v1389_v10 = vpop.f32.mrf.mxu0 }
 0x121   : >> { %v1472_v43 = vadd.f32 %v1910_v59, %v1406_v38  ;;  %v1404_v44 = vadd.f32 %v1389_v10, %v1327_v24 }
 0x122   : >> { %v1905_v45 = vpop.f32.mrf.mxu0 }
 0x123   : >> { %v1476_v56 = vadd.f32 %v2365_v35, %v1472_v43  ;;  %v1470_v46 = vadd.f32 %v1455_v37, %v1404_v44  ;;  %v1407_v50 = vadd.f32 %v1905_v45, %v1330_v39 }
 0x124   : >> { %v1392_v30 = vpop.f32.mrf.mxu0 }
 0x125   : >> { %v1480_v54 = vmax.f32 %v1476_v56, 0.0  ;;  %v1474_v49 = vadd.f32 %v2365_v35, %v1470_v46  ;;  %v1473_v60 = vadd.f32 %v1911_v12, %v1407_v50  ;;  %v1405_v47 = vadd.f32 %v1392_v30, %v1328_v52 }
 0x127   : >> { %v1484_v19 = vmax.f32 %v942_v58, %v1480_v54  ;;  %v1478_v21 = vmax.f32 %v1474_v49, 0.0  ;;  %v1477_v26 = vadd.f32 %v2365_v35, %v1473_v60  ;;  %v1471_v9 = vadd.f32 %v1458_v51, %v1405_v47 }
 0x129   : >> { %1489 = vst.msk [vmem:[#allocation2 + $0x10] sm:$0xff] %vm1486_vm4, %v1484_v19  ;;  %v1482_v53 = vmax.f32 %v940_v62, %v1478_v21  ;;  %v1481_v32 = vmax.f32 %v1477_v26, 0.0  ;;  %v1475_v25 = vadd.f32 %v2365_v35, %v1471_v9 }
 0x12b   : >> { %1487 = vst.msk [vmem:[#allocation2] sm:$0xff] %vm1486_vm4, %v1482_v53  ;;  %v1485_v28 = vmax.f32 %v943_v31, %v1481_v32  ;;  %v1479_v11 = vmax.f32 %v1475_v25, 0.0 }
 0x12d   : >> { %1491 = vst.msk [vmem:[#allocation2 + $0x18] sm:$0xf] %vm1490_vm5, %v1485_v28  ;;  %v1483_v33 = vmax.f32 %v941_v6, %v1479_v11 }
 0x12f   : >> { %1488 = vst.msk [vmem:[#allocation2 + $0x8] sm:$0xff] %vm1486_vm4, %v1483_v33 }
 0x134   : >> { %v1494_v55 = vld [vmem:[#allocation2 + $0x10] ss:$2 sm:$0x3f]  ;;  %v1498_v14 = vld [vmem:[#allocation2 + $0x11] ss:$2 sm:$0x3f] }
 0x135   : >> { %v1500_v57 = vmax.f32 %v1494_v55, %v1498_v14 }
 0x136   : >> { %v1492_v0 = vld [vmem:[#allocation2] ss:$2 sm:$0xff]  ;;  %v1496_v13 = vld [vmem:[#allocation2 + $0x1] ss:$2 sm:$0xff] }
 0x137   : >> { %v1748_v15 = vpack.c.bf16 %v1500_v57, %v1500_v57  ;;  %v1499_v59 = vmax.f32 %v1492_v0, %v1496_v13  ;;  %228 = sbr.rel (!%p226_p5) target bundleno = 17 (0x11), region = 91 }
 0x139   : >> { %1513 = vst.msk [vmem:[%s1510_s27 + $0x4] sm:$0x7] %vm1512_vm6, %v1748_v15  ;;  %v1747_v29 = vpack.c.bf16 %v1499_v59, %v1499_v59 }
 0x13b   : >> { %1511 = vst.msk [vmem:[%s1510_s27] sm:$0xf] %vm1490_vm5, %v1747_v29 }
 0x13c PF: > { %s13_s14 = sadd.s32 1, %s2006_s14   ;;  %s2369_s12 = smov %s2002_s13 }
 0x13d   : > { %p10_p6 = scmp.ge.s32.totalorder %s13_s14, 4   ;;  %s2370_s13 = smov %s2372_s15 }
 0x13f   :  { %12 = sbr.rel (!%p10_p6) target bundleno = 2 (0x2), region = 102 }

</bundles_post_ra>
